<compile_context>
chip_gen: v6e
topology: v6e:2x2x1
jax: 0.10.0
libtpu: 0.0.40
codegen_flags: <defaults>
</compile_context>

<pallas_src>
import functools
import math

import jax
import jax.numpy as jnp
import numpy as np
from jax import lax
from jax.experimental import pallas as pl
from jax.experimental.pallas import tpu as pltpu

_MASK_VAL = -1e30   # additive bias for masked logits
_M_FLOOR = -1e29    # floor for the running max so exp(_MASK_VAL - m) == 0


def _round_up(x, m):
    return (x + m - 1) // m * m


def _vmem_limit_bytes():
    """Scoped-VMEM limit with headroom, derived from the actual chip when possible."""
    try:
        cap = pltpu.get_tpu_info().vmem_capacity_bytes
        return int(min(cap - (16 << 20), 112 << 20))
    except Exception:
        return 48 << 20          # safe for v7x's 64 MiB per-TC VMEM


# --------------------------- projection kernel ----------------------------- #
def _gat_project_kernel(x_ref, w_ref, asrc_ref, adst_ref,
                        h_ref, esrcT_ref, edst_ref):
    # h = x @ W (all heads tightly packed on lanes), computed once per layer.
    h_all = jnp.dot(x_ref[...], w_ref[...],
                    preferred_element_type=jnp.float32)           # [pm, Cp] f32
    h_ref[...] = h_all.astype(h_ref.dtype)                        # bf16 stream

    trans_b = (((1,), (1,)), ((), ()))
    # e_srcT[h, n] = sum_f a_src[h, f] * h[n, f]   (block "diagonal" a_src rows)
    esrcT_ref[...] = lax.dot_general(
        asrc_ref[...], h_all, trans_b, preferred_element_type=jnp.float32)
    # e_dst[n, h]  = sum_f a_dst[h, f] * h[n, f]
    edst_ref[...] = lax.dot_general(
        h_all, adst_ref[...], trans_b, preferred_element_type=jnp.float32)


# ---------------------------- attention kernel ------------------------------ #
def _gat_attn_kernel(tidx_ref, cnt_ref,                     # scalar prefetch (SMEM)
                     edst_ref, esrcT_ref, h_ref, adj_ref, hmask_ref, bias_ref,
                     out_ref, m_scr, l_scr, acc_scr,
                     *, heads, concat, apply_elu, neg_slope):
    i = pl.program_id(0)
    j = pl.program_id(1)
    nj = pl.num_programs(1)

    @pl.when(j == 0)
    def _init():
        m_scr[...] = jnp.full_like(m_scr, _MASK_VAL)
        l_scr[...] = jnp.zeros_like(l_scr)
        acc_scr[...] = jnp.zeros_like(acc_scr)

    # Skip padded schedule entries (block-sparse: only tiles with edges count).
    @pl.when(j < cnt_ref[i])
    def _compute():
        # Head-invariant work, once per (row tile, source tile).
        neg = jnp.where(adj_ref[...] > 0, 0.0, _MASK_VAL)         # [bm, bk] f32
        e_srcT = esrcT_ref[...]                                   # [8,  bk] f32
        h_src = h_ref[...]                                        # [bk, Cp] bf16

        for hd in range(heads):
            # logits = LeakyReLU_0.2(e_dst_i + e_src_j) + mask_bias
            logits = edst_ref[:, hd:hd + 1] + e_srcT[hd:hd + 1, :]
            logits = jnp.maximum(logits, neg_slope * logits) + neg

            m_prev = m_scr[:, hd:hd + 1]                          # [bm, 1]
            m_tile = jnp.max(logits, axis=1, keepdims=True)
            # Clamp so exp(_MASK_VAL - m_new) underflows to exactly 0 even when a
            # whole tile-row is masked (no second mask multiply needed).
            m_new = jnp.maximum(jnp.maximum(m_prev, m_tile), _M_FLOOR)

            p = jnp.exp(logits - m_new)                           # [bm, bk] f32
            corr = jnp.exp(m_prev - m_new)                        # [bm, 1]
            l_scr[:, hd:hd + 1] = (corr * l_scr[:, hd:hd + 1]
                                   + jnp.sum(p, axis=1, keepdims=True))
            # bf16 x bf16 -> f32 accumulation on the MXU; per-head acc keeps the
            # full lane width (per-head lanes are selected once in the finalize).
            acc_scr[hd] = corr * acc_scr[hd] + jnp.dot(
                p.astype(h_src.dtype), h_src,
                preferred_element_type=jnp.float32)
            m_scr[:, hd:hd + 1] = m_new

    @pl.when(j == nj - 1)
    def _finalize():
        bias = bias_ref[...]                                      # [1, Cp]
        if concat:
            # Exact reciprocal (once per row tile) — approx recip was the source
            # of the rev-2 tolerance failure.
            res = acc_scr[0] * ((1.0 / l_scr[:, 0:1]) * hmask_ref[0:1, :])
            for hd in range(1, heads):
                res = res + acc_scr[hd] * ((1.0 / l_scr[:, hd:hd + 1])
                                           * hmask_ref[hd:hd + 1, :])
            res = res + bias
        else:
            # Non-concat path only used with heads == 1 (as in the PyTorch model).
            res = acc_scr[0] * (1.0 / l_scr[:, 0:1]) + bias
        if apply_elu:
            res = jnp.where(res > 0.0, res,
                            jnp.exp(jnp.minimum(res, 0.0)) - 1.0)
        out_ref[...] = res.astype(out_ref.dtype)


# ------------------------------ layer wrapper ------------------------------- #
def gat_conv(x_p, w_p, asrc, adst, bias_p, hmask, adj_p, tile_idx, counts,
             nj_max, *, heads, concat, apply_elu, bm, bk, proj_rows=1024,
             neg_slope=0.2, vmem_limit=None):
    """One GATConv layer on padded, lane-dense (tightly head-packed) inputs."""
    assert heads <= 8, "e_srcT packs heads onto 8 sublanes"
    assert concat or heads == 1, "non-concat path implemented for heads == 1"
    n_p, fin_p = x_p.shape
    cp = w_p.shape[1]                       # packed output width (multiple of 128)
    assert bias_p.shape[1] == cp and hmask.shape == (8, cp)
    assert n_p % bm == 0 and n_p % bk == 0, "pad N up to a multiple of the tiles"
    if vmem_limit is None:
        vmem_limit = _vmem_limit_bytes()

    # Projection row tile: decoupled from the attention tile, as large as fits.
    pm = min(n_p, _round_up(proj_rows, 128))
    while n_p % pm:
        pm -= 128

    # ---- kernel 1: projection (h, e_src, e_dst computed once per layer) ----
    h_all, e_srcT, e_dst = pl.pallas_call(
        _gat_project_kernel,
        grid=(n_p // pm,),
        in_specs=[
            pl.BlockSpec((pm, fin_p), lambda i: (i, 0)),
            pl.BlockSpec((fin_p, cp), lambda i: (0, 0)),
            pl.BlockSpec((8, cp), lambda i: (0, 0)),
            pl.BlockSpec((128, cp), lambda i: (0, 0)),
        ],
        out_specs=(
            pl.BlockSpec((pm, cp), lambda i: (i, 0)),
            pl.BlockSpec((8, pm), lambda i: (0, i)),
            pl.BlockSpec((pm, 128), lambda i: (i, 0)),
        ),
        out_shape=(
            jax.ShapeDtypeStruct((n_p, cp), jnp.bfloat16),   # h streamed in bf16
            jax.ShapeDtypeStruct((8, n_p), jnp.float32),
            jax.ShapeDtypeStruct((n_p, 128), jnp.float32),
        ),
        compiler_params=pltpu.CompilerParams(
            dimension_semantics=("parallel",),
            vmem_limit_bytes=vmem_limit),
    )(x_p, w_p, asrc, adst)

    # ---- kernel 2: block-sparse online-softmax attention + aggregation -----
    attn_kernel = functools.partial(
        _gat_attn_kernel, heads=heads, concat=concat, apply_elu=apply_elu,
        neg_slope=neg_slope)
    out = pl.pallas_call(
        attn_kernel,
        grid_spec=pltpu.PrefetchScalarGridSpec(
            num_scalar_prefetch=2,                 # tile_idx, counts -> SMEM
            grid=(n_p // bm, nj_max),
            in_specs=[
                pl.BlockSpec((bm, 128), lambda i, j, t, c: (i, 0)),        # e_dst
                pl.BlockSpec((8, bk), lambda i, j, t, c: (0, t[i, j])),    # e_srcT
                pl.BlockSpec((bk, cp), lambda i, j, t, c: (t[i, j], 0)),   # h (src)
                pl.BlockSpec((bm, bk), lambda i, j, t, c: (i, t[i, j])),   # adj int8
                pl.BlockSpec((8, cp), lambda i, j, t, c: (0, 0)),          # head mask
                pl.BlockSpec((1, cp), lambda i, j, t, c: (0, 0)),          # bias
            ],
            out_specs=pl.BlockSpec((bm, cp), lambda i, j, t, c: (i, 0)),
            scratch_shapes=[
                pltpu.VMEM((bm, 128), jnp.float32),        # running max (lane=head)
                pltpu.VMEM((bm, 128), jnp.float32),        # running denom
                pltpu.VMEM((heads, bm, cp), jnp.float32),  # per-head acc (f32)
            ],
        ),
        out_shape=jax.ShapeDtypeStruct((n_p, cp), jnp.float32),
        compiler_params=pltpu.CompilerParams(
            dimension_semantics=("parallel", "arbitrary"),
            vmem_limit_bytes=vmem_limit),
    )(tile_idx, counts, e_dst, e_srcT, h_all, adj_p, hmask, bias_p)
    return out


def gat_forward(packed, x, adj_p, tile_idx, counts, nj_max, *, n, heads,
                block_rows=512, block_cols=512):
    """Padded forward pass. Returns [N_p, c2p]; caller slices [:n, :out_ch]."""
    n_p = adj_p.shape[0]
    bm, bk = block_rows, block_cols
    x_p = jnp.zeros((n_p, packed["fin1"]), jnp.float32)
    x_p = x_p.at[:n, :x.shape[1]].set(x)
    # F.dropout(p=0.6) / attention dropout(0.3) are identity in eval mode.
    h1 = gat_conv(x_p, packed["w1p"], packed["a1s"], packed["a1d"],
                  packed["b1p"], packed["hm1"], adj_p, tile_idx, counts, nj_max,
                  heads=heads, concat=True, apply_elu=True, bm=bm, bk=bk)
    out = gat_conv(h1, packed["w2p"], packed["a2s"], packed["a2d"],
                   packed["b2p"], packed["hm2"], adj_p, tile_idx, counts, nj_max,
                   heads=1, concat=False, apply_elu=False, bm=bm, bk=bk)
    return out


# ----------------------- host-side parameter packing ----------------------- #
def init_gat_params(key, in_ch, hid, out_ch, heads):
    ks = jax.random.split(key, 6)

    def glorot(k, shape):
        lim = (6.0 / (shape[0] + shape[1])) ** 0.5
        return jax.random.uniform(k, shape, jnp.float32, -lim, lim)

    return {
        "w1": glorot(ks[0], (in_ch, heads * hid)),
        "a1_src": glorot(ks[1], (heads, hid)),
        "a1_dst": glorot(ks[2], (heads, hid)),
        "b1": jnp.zeros((1, heads * hid), jnp.float32),
        "w2": glorot(ks[3], (heads * hid, out_ch)),
        "a2_src": glorot(ks[4], (1, out_ch)),
        "a2_dst": glorot(ks[5], (1, out_ch)),
        "b2": jnp.zeros((1, out_ch), jnp.float32),
    }


def pack_gat_params(params, *, in_ch, hid, out_ch, heads):
    """Tight head packing: head h owns lanes [h*hid, (h+1)*hid) of a 128-padded block."""
    fin1 = _round_up(in_ch, 128)
    c1 = heads * hid
    c1p = _round_up(c1, 128)
    c2p = _round_up(out_ch, 128)

    w1p = jnp.zeros((fin1, c1p), jnp.float32).at[:in_ch, :c1].set(params["w1"])
    b1p = jnp.zeros((1, c1p), jnp.float32).at[0, :c1].set(params["b1"][0])
    a1s = jnp.zeros((8, c1p), jnp.float32)
    a1d = jnp.zeros((128, c1p), jnp.float32)
    hm1 = jnp.zeros((8, c1p), jnp.float32)
    for h in range(heads):
        sl = slice(h * hid, (h + 1) * hid)
        a1s = a1s.at[h, sl].set(params["a1_src"][h])
        a1d = a1d.at[h, sl].set(params["a1_dst"][h])
        hm1 = hm1.at[h, sl].set(1.0)

    # Layer 2 consumes layer 1's tightly packed output [N_p, c1p] directly.
    w2p = jnp.zeros((c1p, c2p), jnp.float32).at[:c1, :out_ch].set(params["w2"])
    a2s = jnp.zeros((8, c2p), jnp.float32).at[0, :out_ch].set(params["a2_src"][0])
    a2d = jnp.zeros((128, c2p), jnp.float32).at[0, :out_ch].set(params["a2_dst"][0])
    b2p = jnp.zeros((1, c2p), jnp.float32).at[0, :out_ch].set(params["b2"][0])
    hm2 = jnp.zeros((8, c2p), jnp.float32).at[0, :out_ch].set(1.0)

    return dict(w1p=w1p, a1s=a1s, a1d=a1d, b1p=b1p, hm1=hm1,
                w2p=w2p, a2s=a2s, a2d=a2d, b2p=b2p, hm2=hm2,
                fin1=fin1, c1p=c1p, c2p=c2p)


# ------------------- adjacency + block-sparse schedule ---------------------- #
def build_adj_int8(edge_index, n, n_p):
    src = np.asarray(edge_index[0]).astype(np.int64)
    dst = np.asarray(edge_index[1]).astype(np.int64)
    adj = np.zeros((n_p, n_p), np.int8)
    adj[dst, src] = 1                      # message flows source -> target
    idx = np.arange(n_p)
    adj[idx, idx] = 1                      # self loops (incl. padded rows)
    return adj


def build_block_schedule(adj_np, bm, bk):
    """Per target-row tile, the list of source tiles with at least one edge."""
    n_p = adj_np.shape[0]
    ni, nj = n_p // bm, n_p // bk
    nz = adj_np.reshape(ni, bm, nj, bk).any(axis=(1, 3))          # [ni, nj]
    counts = nz.sum(axis=1).astype(np.int32)                      # >= 1 (self loops)
    nj_max = int(counts.max())
    tidx = np.zeros((ni, nj_max), np.int32)
    for i in range(ni):
        cols = np.nonzero(nz[i])[0]
        tidx[i, :len(cols)] = cols
        tidx[i, len(cols):] = cols[-1]     # repeat last tile: no extra DMA, compute skipped
    return jnp.asarray(tidx), jnp.asarray(counts), nj_max


# ----------------------------- pure-JAX reference -------------------------- #
def _gat_conv_ref(x, w, a_src, a_dst, bias, adj, *, heads, f_out, concat,
                  apply_elu):
    n = x.shape[0]
    h = (x @ w).reshape(n, heads, f_out)
    e_src = jnp.einsum("nhf,hf->nh", h, a_src)
    e_dst = jnp.einsum("nhf,hf->nh", h, a_dst)
    logits = e_dst[:, None, :] + e_src[None, :, :]
    logits = jnp.where(logits >= 0.0, logits, 0.2 * logits)
    mask = adj[:, :, None] > 0.0
    masked = jnp.where(mask, logits, -1e30)
    m = jnp.max(masked, axis=1, keepdims=True)
    p = jnp.exp(masked - m) * adj[:, :, None]
    alpha = p / jnp.sum(p, axis=1, keepdims=True)
    out = jnp.einsum("ijh,jhf->ihf", alpha, h)
    if concat:
        out = out.reshape(n, heads * f_out) + bias
    else:
        out = out.mean(axis=1) + bias
    if apply_elu:
        out = jnp.where(out > 0.0, out, jnp.exp(jnp.minimum(out, 0.0)) - 1.0)
    return out


def gat_forward_ref(params, x, adj, *, heads, hid, out_ch):
    h1 = _gat_conv_ref(x, params["w1"], params["a1_src"], params["a1_dst"],
                       params["b1"], adj, heads=heads, f_out=hid, concat=True,
                       apply_elu=True)
    h2 = _gat_conv_ref(h1, params["w2"], params["a2_src"], params["a2_dst"],
                       params["b2"], adj, heads=1, f_out=out_ch, concat=False,
                       apply_elu=False)
    return h2


# ---------------------------------- main ----------------------------------- #
if __name__ == "__main__":
    N, IN_CH, HID, OUT_CH, HEADS = 200, 8, 8, 4, 2
    # Small tiles to exercise both the multi-tile online-softmax path and the
    # block-sparse skip path.  For real graphs use 512x512 (default) on
    # v5e/v6e/v7x; the schedule then skips the vast majority of empty blocks.
    BM = BK = 128

    key = jax.random.PRNGKey(0)
    k_x, k1, k2, k3, k4, k5, k6, k_p = jax.random.split(key, 8)
    x = jax.random.normal(k_x, (N, IN_CH), jnp.float32)

    # Two clusters aligned to the 128 tile boundary plus one-way A->B edges,
    # so adjacency block (target tile 0, source tile 1) is empty and the
    # block-sparse schedule actually skips a tile.
    srcA = jax.random.randint(k1, (300,), 0, 128)
    dstA = jax.random.randint(k2, (300,), 0, 128)
    srcB = jax.random.randint(k3, (200,), 128, N)
    dstB = jax.random.randint(k4, (200,), 128, N)
    srcAB = jax.random.randint(k5, (100,), 0, 128)
    dstAB = jax.random.randint(k6, (100,), 128, N)
    src = jnp.concatenate([srcA, srcB, srcAB]).astype(jnp.int32)
    dst = jnp.concatenate([dstA, dstB, dstAB]).astype(jnp.int32)
    edge_index = jnp.stack([src, dst])      # [2, E], row0=source, row1=target

    params = init_gat_params(k_p, IN_CH, HID, OUT_CH, HEADS)
    packed = pack_gat_params(params, in_ch=IN_CH, hid=HID, out_ch=OUT_CH,
                             heads=HEADS)

    n_p = _round_up(N, math.lcm(BM, BK))           # 256 -> 2x2 block grid
    adj_np = build_adj_int8(edge_index, N, n_p)
    tile_idx, counts, nj_max = build_block_schedule(adj_np, BM, BK)
    # Schedule sanity: row tile 0 has one non-empty source block, row tile 1 two.
    assert nj_max == 2 and int(counts[0]) == 1 and int(counts[1]) == 2

    adj_p = jnp.asarray(adj_np)
    out_p = gat_forward(packed, x, adj_p, tile_idx, counts, nj_max,
                        n=N, heads=HEADS, block_rows=BM, block_cols=BK)
    out_p = jax.block_until_ready(out_p)
    out = np.asarray(out_p)[:N, :OUT_CH]

    adj_f = jnp.asarray(adj_np[:N, :N], jnp.float32)
    ref = gat_forward_ref(params, x, adj_f, heads=HEADS, hid=HID,
                          out_ch=OUT_CH)
    # Tolerance covers the bf16 h stream / bf16 aggregation matmuls (f32
    # accumulation, exact softmax denominators); semantic bugs would be >> 0.04.
    np.testing.assert_allclose(out, np.asarray(ref), rtol=4e-2, atol=4e-2)
    assert out.shape == (N, OUT_CH) and out.dtype == np.float32

    print("KERNEL_OK")
</pallas_src>

<mosaic_0001>
module attributes {stable_mosaic.version = 11 : i64} {
  func.func @_gat_project_kernel(%arg0: i32, %arg1: memref<256x128xf32, #tpu.memory_space<vmem>>, %arg2: memref<128x128xf32, #tpu.memory_space<vmem>>, %arg3: memref<8x128xf32, #tpu.memory_space<vmem>>, %arg4: memref<128x128xf32, #tpu.memory_space<vmem>>, %arg5: memref<256x128xbf16, #tpu.memory_space<vmem>>, %arg6: memref<8x256xf32, #tpu.memory_space<vmem>>, %arg7: memref<256x128xf32, #tpu.memory_space<vmem>>) attributes {dimension_semantics = [#tpu.dimension_semantics<parallel>], iteration_bounds = array<i64: 1>, scalar_prefetch = 0 : i64, scratch_operands = 0 : i64, tpu.core_type = #tpu.core_type<tc>, window_params = [{transform_indices = @transform_0, window_bounds = array<i64: 256, 128>}, {pipeline_mode = #tpu.pipeline_mode<synchronous>, transform_indices = @transform_1, window_bounds = array<i64: 128, 128>}, {pipeline_mode = #tpu.pipeline_mode<synchronous>, transform_indices = @transform_2, window_bounds = array<i64: 8, 128>}, {pipeline_mode = #tpu.pipeline_mode<synchronous>, transform_indices = @transform_3, window_bounds = array<i64: 128, 128>}, {transform_indices = @transform_4, window_bounds = array<i64: 256, 128>}, {transform_indices = @transform_5, window_bounds = array<i64: 8, 256>}, {transform_indices = @transform_6, window_bounds = array<i64: 256, 128>}]} {
    %c0 = arith.constant 0 : index
    %c0_0 = arith.constant 0 : index
    %0 = vector.load %arg1[%c0, %c0_0] : memref<256x128xf32, #tpu.memory_space<vmem>>, vector<256x128xf32>
    %c0_1 = arith.constant 0 : index
    %c0_2 = arith.constant 0 : index
    %1 = vector.load %arg2[%c0_1, %c0_2] : memref<128x128xf32, #tpu.memory_space<vmem>>, vector<128x128xf32>
    %cst = arith.constant dense<0.000000e+00> : vector<256x128xf32>
    %2 = tpu.matmul %0, %1, %cst {dimension_numbers = #tpu.dot_dimension_numbers<[1], [0], [0], [1], [0, 0, 1, 1], [], []>} : vector<256x128xf32>, vector<128x128xf32>, vector<256x128xf32> -> vector<256x128xf32>
    %3 = arith.truncf %2 : vector<256x128xf32> to vector<256x128xbf16>
    %c0_3 = arith.constant 0 : index
    %c0_4 = arith.constant 0 : index
    %4 = vector.load %arg5[%c0_3, %c0_4] : memref<256x128xbf16, #tpu.memory_space<vmem>>, vector<256x128xbf16>
    tpu.vector_store %arg5[%c0_3, %c0_4], %3 {strides = array<i32>} : memref<256x128xbf16, #tpu.memory_space<vmem>>, vector<256x128xbf16>,
    %c0_5 = arith.constant 0 : index
    %c0_6 = arith.constant 0 : index
    %5 = vector.load %arg3[%c0_5, %c0_6] : memref<8x128xf32, #tpu.memory_space<vmem>>, vector<8x128xf32>
    %cst_7 = arith.constant dense<0.000000e+00> : vector<8x256xf32>
    %6 = tpu.matmul %5, %2, %cst_7 {dimension_numbers = #tpu.dot_dimension_numbers<[1], [1], [0], [0], [0, 0, 1, 0], [], []>} : vector<8x128xf32>, vector<256x128xf32>, vector<8x256xf32> -> vector<8x256xf32>
    %c0_8 = arith.constant 0 : index
    %c0_9 = arith.constant 0 : index
    %7 = vector.load %arg6[%c0_8, %c0_9] : memref<8x256xf32, #tpu.memory_space<vmem>>, vector<8x256xf32>
    tpu.vector_store %arg6[%c0_8, %c0_9], %6 {strides = array<i32>} : memref<8x256xf32, #tpu.memory_space<vmem>>, vector<8x256xf32>,
    %c0_10 = arith.constant 0 : index
    %c0_11 = arith.constant 0 : index
    %8 = vector.load %arg4[%c0_10, %c0_11] : memref<128x128xf32, #tpu.memory_space<vmem>>, vector<128x128xf32>
    %cst_12 = arith.constant dense<0.000000e+00> : vector<256x128xf32>
    %9 = tpu.matmul %2, %8, %cst_12 {dimension_numbers = #tpu.dot_dimension_numbers<[1], [1], [0], [0], [0, 0, 1, 0], [], []>} : vector<256x128xf32>, vector<128x128xf32>, vector<256x128xf32> -> vector<256x128xf32>
    %c0_13 = arith.constant 0 : index
    %c0_14 = arith.constant 0 : index
    %10 = vector.load %arg7[%c0_13, %c0_14] : memref<256x128xf32, #tpu.memory_space<vmem>>, vector<256x128xf32>
    tpu.vector_store %arg7[%c0_13, %c0_14], %9 {strides = array<i32>} : memref<256x128xf32, #tpu.memory_space<vmem>>, vector<256x128xf32>,
    return
  }
  func.func @transform_0(%arg0: i32) -> (i32, i32) {
    %c0_i32 = arith.constant 0 : i32
    %c0_i32_0 = arith.constant 0 : i32
    return %arg0, %c0_i32 : i32, i32
  }
  func.func @transform_1(%arg0: i32) -> (i32, i32) {
    %c0_i32 = arith.constant 0 : i32
    %c0_i32_0 = arith.constant 0 : i32
    %c0_i32_1 = arith.constant 0 : i32
    return %c0_i32, %c0_i32_0 : i32, i32
  }
  func.func @transform_2(%arg0: i32) -> (i32, i32) {
    %c0_i32 = arith.constant 0 : i32
    %c0_i32_0 = arith.constant 0 : i32
    %c0_i32_1 = arith.constant 0 : i32
    return %c0_i32, %c0_i32_0 : i32, i32
  }
  func.func @transform_3(%arg0: i32) -> (i32, i32) {
    %c0_i32 = arith.constant 0 : i32
    %c0_i32_0 = arith.constant 0 : i32
    %c0_i32_1 = arith.constant 0 : i32
    return %c0_i32, %c0_i32_0 : i32, i32
  }
  func.func @transform_4(%arg0: i32) -> (i32, i32) {
    %c0_i32 = arith.constant 0 : i32
    %c0_i32_0 = arith.constant 0 : i32
    return %arg0, %c0_i32 : i32, i32
  }
  func.func @transform_5(%arg0: i32) -> (i32, i32) {
    %c0_i32 = arith.constant 0 : i32
    %c0_i32_0 = arith.constant 0 : i32
    return %c0_i32, %arg0 : i32, i32
  }
  func.func @transform_6(%arg0: i32) -> (i32, i32) {
    %c0_i32 = arith.constant 0 : i32
    %c0_i32_0 = arith.constant 0 : i32
    return %arg0, %c0_i32 : i32, i32
  }
}

</mosaic_0001>

<bundles_post_ra>
// kernel: tpu_custom_call.1
= control target key start
LH: loop header
LB: loop body
LE: loop exit
PB: predicated region body
PF: predicated region fallthrough
CT: control target
= control target key end

     0   :  { %12 = vsyncpa [#allocation3], 0  ;;  %s1686_s0 = inlined_call_operand.hbm [shape: f32[256,128], index: 0, kind: input, shape index: {}]   ;;  %s1687_s1 = inlined_call_operand.hbm [shape: f32[128,128], index: 1, kind: input, shape index: {}]   ;;  %s1688_s2 = inlined_call_operand.hbm [shape: f32[8,128], index: 2, kind: input, shape index: {}]   ;;  %s1689_s3 = inlined_call_operand.hbm [shape: f32[128,128], index: 3, kind: input, shape index: {}]   ;;  %s1690_s4 = inlined_call_operand.hbm [shape: bf16[256,128], index: 4, kind: output, shape index: {0}]   ;;  %s1691_s5 = inlined_call_operand.hbm [shape: f32[8,256], index: 5, kind: output, shape index: {1}]   ;;  %s1692_s6 = inlined_call_operand.hbm [shape: f32[256,128], index: 6, kind: output, shape index: {2}]  }
   0x1   :  { %13 = vsyncpa [#allocation6], 0 }
   0x2   :  { %14 = vsyncpa [#allocation9], 0 }
   0x3   :  { %15 = vsyncpa [#allocation4], 0 }
   0x4   :  { %16 = vsyncpa [#allocation12], 0  ;;  %s1513_s21 = smov [#allocation5]   ;;  %s1514_s23 = smov [#allocation2]  }
   0x5   :  { %s34_s22 = sshll.u32 %s1513_s21, 4  ;;  %s22_s24 = sshll.u32 %s1514_s23, 4  ;;  %s35_s22 = int_to_ptr.vmem [resolvable:$true] %s34_s22  ;;  %s23_s24 = int_to_ptr.vmem [resolvable:$true] %s22_s24 }
   0x6   :  { %s1371_s25 = scalar_lea.vmem %s35_s22, 2048  ;;  %p1376_p1 = scmp.lt.s32.totalorder %s35_s22, %s35_s22 }
   0x7   :  { %p1372_p0 = scmp.ne.s32.totalorder %s35_s22, %s1371_s25  ;;  %p1377_p2 = scmp.lt.s32.totalorder %s1371_s25, %s1371_s25 }
   0x9   :  { %p1378_p3 = por %p1377_p2, %p1376_p1 }
   0xb   :  { %p1379_p4 = pnand %p1378_p3, %p1372_p0 }
   0xd   :  { %1382 = shalt.err (!%p1379_p4)
}
   0xe   :  { %s1515_s26 = smov 128   ;;  %s1516_s27 = smov 8  }
   0xf   :  { %40 = dma.hbm_to_vmem [thread:$0]  %s1687_s1, 2048, %s35_s22, [#allocation6], %s1515_s26, %s1515_s26, %s1516_s27  }
  0x10   :  { %s1391_s30 = scalar_lea.vmem %s23_s24, 4096  ;;  %p1396_p6 = scmp.lt.s32.totalorder %s23_s24, %s23_s24 }
  0x11   :  { %p1392_p5 = scmp.ne.s32.totalorder %s23_s24, %s1391_s30  ;;  %p1397_p7 = scmp.lt.s32.totalorder %s1391_s30, %s1391_s30 }
  0x13   :  { %p1398_p8 = por %p1397_p7, %p1396_p6 }
  0x15   :  { %p1399_p9 = pnand %p1398_p8, %p1392_p5 }
  0x17   :  { %1402 = shalt.err (!%p1399_p9)
}
  0x18   :  { %28 = dma.hbm_to_vmem [thread:$0]  %s1686_s0, 4096, %s23_s24, [#allocation3], %s1515_s26, %s1515_s26, %s1516_s27  }
  0x19   :  { %s1517_s9 = smov [#allocation7]   ;;  %s1518_s11 = smov [#allocation8]  }
  0x1a   :  { %s47_s10 = sshll.u32 %s1517_s9, 4  ;;  %s56_s12 = sshll.u32 %s1518_s11, 4  ;;  %s48_s10 = int_to_ptr.vmem [resolvable:$true] %s47_s10  ;;  %s57_s12 = int_to_ptr.vmem [resolvable:$true] %s56_s12 }
  0x1b   :  { %s1411_s1 = scalar_lea.vmem %s48_s10, 128  ;;  %p1416_p11 = scmp.lt.s32.totalorder %s48_s10, %s48_s10 }
  0x1c   :  { %p1412_p10 = scmp.ne.s32.totalorder %s48_s10, %s1411_s1  ;;  %p1417_p12 = scmp.lt.s32.totalorder %s1411_s1, %s1411_s1 }
  0x1e   :  { %p1418_p13 = por %p1417_p12, %p1416_p11 }
  0x20   :  { %p1419_p0 = pnand %p1418_p13, %p1412_p10 }
  0x22   :  { %1422 = shalt.err (!%p1419_p0)
}
  0x23   :  { %50 = dma.hbm_to_vmem [thread:$0]  %s1688_s2, 128, %s48_s10, [#allocation6]  }
  0x24   :  { %s1431_s15 = scalar_lea.vmem %s57_s12, 2048  ;;  %p1436_p2 = scmp.lt.s32.totalorder %s57_s12, %s57_s12 }
  0x25   :  { %p1432_p1 = scmp.ne.s32.totalorder %s57_s12, %s1431_s15  ;;  %p1437_p3 = scmp.lt.s32.totalorder %s1431_s15, %s1431_s15 }
  0x27   :  { %p1438_p4 = por %p1437_p3, %p1436_p2 }
  0x29   :  { %p1439_p5 = pnand %p1438_p4, %p1432_p1 }
  0x2b   :  { %1442 = shalt.err (!%p1439_p5)
}
  0x2c   :  { %62 = dma.hbm_to_vmem [thread:$0]  %s1689_s3, 2048, %s57_s12, [#allocation9], %s1515_s26, %s1515_s26, %s1516_s27  }
  0x2d   :  { %1503 = dma.done.wait [#allocation3], 4096  }
  0x2e   :  { %1504 = vsyncadd [#allocation3], 4294963200 }
  0x2f   :  { %1505 = dma.done.wait [#allocation6], 2176  }
  0x30   :  { %1506 = vsyncadd [#allocation6], 4294965120 }
  0x31   :  { %1507 = dma.done.wait [#allocation9], 2048  }
  0x32   :  { %1508 = vsyncadd [#allocation9], 4294965248  ;;  %v122_v0 = vld [vmem:[#allocation5 + $0x78] sm:$0xff]  ;;  %v121_v1 = vld [vmem:[#allocation5 + $0x70] sm:$0xff]  ;;  %s1519_s2 = smov [#allocation10]  }
  0x33   :  { %1192 = vmatprep.subr.mxu1 %v122_v0  ;;  %v120_v2 = vld [vmem:[#allocation5 + $0x68] sm:$0xff]  ;;  %v119_v3 = vld [vmem:[#allocation5 + $0x60] sm:$0xff]  ;;  %v118_v5 = vld [vmem:[#allocation5 + $0x58] sm:$0xff]  ;;  %s860_s3 = sshll.u32 %s1519_s2, 4  ;;  %s861_s3 = int_to_ptr.vmem [resolvable:$true] %s860_s3 }
  0x34   :  { %1193 = vmatpush3.msra.mxu1 %v122_v0  ;;  %v75_v4 = vld [vmem:[#allocation2] sm:$0xff]  ;;  %v117_v6 = vld [vmem:[#allocation5 + $0x50] sm:$0xff]  ;;  %v116_v7 = vld [vmem:[#allocation5 + $0x48] sm:$0xff]  ;;  %s1443_s17 = scalar_lea.vmem %s861_s3, 2048  ;;  %p1448_p7 = scmp.lt.s32.totalorder %s861_s3, %s861_s3 }
  0x35   :  { %1194 = vmatprep.subr.mxu1 %v121_v1  ;;  %1224 = vmatprep.mubr.f32.mxu1 %v75_v4  ;;  %v115_v8 = vld [vmem:[#allocation5 + $0x40] sm:$0xff]  ;;  %v114_v9 = vld [vmem:[#allocation5 + $0x38] sm:$0xff]  ;;  %v113_v10 = vld [vmem:[#allocation5 + $0x30] sm:$0xff]  ;;  %p1444_p6 = scmp.ne.s32.totalorder %s861_s3, %s1443_s17  ;;  %p1449_p8 = scmp.lt.s32.totalorder %s1443_s17, %s1443_s17 }
  0x36   :  { %1195 = vmatpush3.msra.mxu1 %v121_v1  ;;  %v597_v11 = vld [vmem:[#allocation8 + $0x78] sm:$0xff]  ;;  %v596_v12 = vld [vmem:[#allocation8 + $0x70] sm:$0xff]  ;;  %v112_v13 = vld [vmem:[#allocation5 + $0x28] sm:$0xff] }
  0x37   :  { %1196 = vmatprep.subr.mxu1 %v120_v2  ;;  %1272 = vmatprep.subr.mxu0 %v597_v11  ;;  %v111_v14 = vld [vmem:[#allocation5 + $0x20] sm:$0xff]  ;;  %v595_v15 = vld [vmem:[#allocation8 + $0x68] sm:$0xff]  ;;  %v110_v16 = vld [vmem:[#allocation5 + $0x18] sm:$0xff]  ;;  %p1450_p9 = por %p1449_p8, %p1448_p7 }
  0x38   :  { %1197 = vmatpush3.msra.mxu1 %v120_v2  ;;  %1273 = vmatpush3.xpose.msra.mxu0 %v597_v11  ;;  %v109_v17 = vld [vmem:[#allocation5 + $0x10] sm:$0xff]  ;;  %v594_v18 = vld [vmem:[#allocation8 + $0x60] sm:$0xff]  ;;  %v107_v20 = vld [vmem:[#allocation5] sm:$0xff] }
  0x39   :  { %1198 = vmatprep.subr.mxu1 %v119_v3  ;;  %1274 = vmatprep.subr.mxu0 %v596_v12  ;;  %v108_v19 = vld [vmem:[#allocation5 + $0x8] sm:$0xff]  ;;  %v593_v21 = vld [vmem:[#allocation8 + $0x58] sm:$0xff]  ;;  %v77_v23 = vld [vmem:[#allocation2 + $0x10] sm:$0xff]  ;;  %p1451_p10 = pnand %p1450_p9, %p1444_p6 }
  0x3a   :  { %1199 = vmatpush3.msra.mxu1 %v119_v3  ;;  %v76_v22 = vld [vmem:[#allocation2 + $0x8] sm:$0xff]  ;;  %v592_v24 = vld [vmem:[#allocation8 + $0x50] sm:$0xff]  ;;  %v79_v26 = vld [vmem:[#allocation2 + $0x20] sm:$0xff] }
  0x3b   :  { %1200 = vmatprep.subr.mxu1 %v118_v5  ;;  %v78_v25 = vld [vmem:[#allocation2 + $0x18] sm:$0xff]  ;;  %v591_v27 = vld [vmem:[#allocation8 + $0x48] sm:$0xff]  ;;  %v80_v28 = vld [vmem:[#allocation2 + $0x28] sm:$0xff] }
  0x3c   :  { %1201 = vmatpush3.msra.mxu1 %v118_v5  ;;  %1275 = vmatpush3.xpose.msra.mxu0 %v596_v12  ;;  %v81_v29 = vld [vmem:[#allocation2 + $0x30] sm:$0xff]  ;;  %v590_v30 = vld [vmem:[#allocation8 + $0x40] sm:$0xff]  ;;  %v82_v31 = vld [vmem:[#allocation2 + $0x38] sm:$0xff] }
  0x3d   :  { %1202 = vmatprep.subr.mxu1 %v117_v6  ;;  %1276 = vmatprep.subr.mxu0 %v595_v15  ;;  %v83_v32 = vld [vmem:[#allocation2 + $0x40] sm:$0xff]  ;;  %v84_v34 = vld [vmem:[#allocation2 + $0x48] sm:$0xff]  ;;  %v85_v35 = vld [vmem:[#allocation2 + $0x50] sm:$0xff] }
  0x3e   :  { %1203 = vmatpush3.msra.mxu1 %v117_v6  ;;  %v589_v33 = vld [vmem:[#allocation8 + $0x38] sm:$0xff]  ;;  %v588_v36 = vld [vmem:[#allocation8 + $0x30] sm:$0xff]  ;;  %v587_v39 = vld [vmem:[#allocation8 + $0x28] sm:$0xff] }
  0x3f   :  { %1204 = vmatprep.subr.mxu1 %v116_v7  ;;  %v86_v37 = vld [vmem:[#allocation2 + $0x58] sm:$0xff]  ;;  %v87_v38 = vld [vmem:[#allocation2 + $0x60] sm:$0xff]  ;;  %v88_v40 = vld [vmem:[#allocation2 + $0x68] sm:$0xff] }
  0x40   :  { %1205 = vmatpush3.msra.mxu1 %v116_v7  ;;  %1277 = vmatpush3.xpose.msra.mxu0 %v595_v15  ;;  %v89_v41 = vld [vmem:[#allocation2 + $0x70] sm:$0xff]  ;;  %v586_v42 = vld [vmem:[#allocation8 + $0x20] sm:$0xff]  ;;  %v90_v43 = vld [vmem:[#allocation2 + $0x78] sm:$0xff] }
  0x41   :  { %1206 = vmatprep.subr.mxu1 %v115_v8  ;;  %1278 = vmatprep.subr.mxu0 %v594_v18  ;;  %v91_v44 = vld [vmem:[#allocation2 + $0x80] sm:$0xff]  ;;  %v92_v46 = vld [vmem:[#allocation2 + $0x88] sm:$0xff]  ;;  %v93_v47 = vld [vmem:[#allocation2 + $0x90] sm:$0xff] }
  0x42   :  { %1207 = vmatpush3.msra.mxu1 %v115_v8  ;;  %v585_v45 = vld [vmem:[#allocation8 + $0x18] sm:$0xff]  ;;  %v584_v48 = vld [vmem:[#allocation8 + $0x10] sm:$0xff]  ;;  %v583_v51 = vld [vmem:[#allocation8 + $0x8] sm:$0xff] }
  0x43   :  { %1208 = vmatprep.subr.mxu1 %v114_v9  ;;  %v94_v49 = vld [vmem:[#allocation2 + $0x98] sm:$0xff]  ;;  %v95_v50 = vld [vmem:[#allocation2 + $0xa0] sm:$0xff]  ;;  %v96_v52 = vld [vmem:[#allocation2 + $0xa8] sm:$0xff] }
  0x44   :  { %1209 = vmatpush3.msra.mxu1 %v114_v9  ;;  %1279 = vmatpush3.xpose.msra.mxu0 %v594_v18  ;;  %v97_v53 = vld [vmem:[#allocation2 + $0xb0] sm:$0xff]  ;;  %v98_v54 = vld [vmem:[#allocation2 + $0xb8] sm:$0xff]  ;;  %v99_v55 = vld [vmem:[#allocation2 + $0xc0] sm:$0xff] }
  0x45   :  { %1210 = vmatprep.subr.mxu1 %v113_v10  ;;  %1280 = vmatprep.subr.mxu0 %v593_v21  ;;  %v100_v56 = vld [vmem:[#allocation2 + $0xc8] sm:$0xff]  ;;  %v101_v57 = vld [vmem:[#allocation2 + $0xd0] sm:$0xff]  ;;  %v102_v58 = vld [vmem:[#allocation2 + $0xd8] sm:$0xff] }
  0x46   :  { %1211 = vmatpush3.msra.mxu1 %v113_v10  ;;  %v103_v59 = vld [vmem:[#allocation2 + $0xe0] sm:$0xff]  ;;  %v104_v60 = vld [vmem:[#allocation2 + $0xe8] sm:$0xff]  ;;  %v105_v61 = vld [vmem:[#allocation2 + $0xf0] sm:$0xff] }
  0x47   :  { %1212 = vmatprep.subr.mxu1 %v112_v13  ;;  %v106_v62 = vld [vmem:[#allocation2 + $0xf8] sm:$0xff]  ;;  %v582_v63 = vld [vmem:[#allocation8] sm:$0xff]  ;;  %v1580_v0 = vld [vmem:[#allocation7] sm:$0xff] }
  0x48   :  { %1213 = vmatpush3.msra.mxu1 %v112_v13  ;;  %1281 = vmatpush3.xpose.msra.mxu0 %v593_v21 }
  0x49   :  { %1214 = vmatprep.subr.mxu1 %v111_v14  ;;  %1282 = vmatprep.subr.mxu0 %v592_v24 }
  0x4a   :  { %1215 = vmatpush3.msra.mxu1 %v111_v14 }
  0x4b   :  { %1216 = vmatprep.subr.mxu1 %v110_v16 }
  0x4c   :  { %1217 = vmatpush3.msra.mxu1 %v110_v16  ;;  %1283 = vmatpush3.xpose.msra.mxu0 %v592_v24 }
  0x4d   :  { %1218 = vmatprep.subr.mxu1 %v109_v17  ;;  %1284 = vmatprep.subr.mxu0 %v591_v27 }
  0x4e   :  { %1219 = vmatpush3.msra.mxu1 %v109_v17 }
  0x4f   :  { %1220 = vmatprep.subr.mxu1 %v108_v19 }
  0x50   :  { %1221 = vmatpush3.msra.mxu1 %v108_v19  ;;  %1285 = vmatpush3.xpose.msra.mxu0 %v591_v27 }
  0x51   :  { %1222 = vmatprep.subr.mxu1 %v107_v20  ;;  %1286 = vmatprep.subr.mxu0 %v590_v30 }
  0x52   :  { %1223 = vmatpush3.msra.mxu1 %v107_v20 }
  0x53   :  { %1225 = vmatmul.mubr.f32.vlgmr.msra.gmra.mxu1 %v76_v22 }
  0x54   :  { %1227 = vmatprep.mubr.f32.mxu1 %v77_v23  ;;  %1287 = vmatpush3.xpose.msra.mxu0 %v590_v30 }
  0x55   :  { %1288 = vmatprep.subr.mxu0 %v589_v33 }
  0x57   :  { %1228 = vmatmul.mubr.f32.gmra.mxu1 %v78_v25 }
  0x58   :  { %1230 = vmatprep.mubr.f32.mxu1 %v79_v26  ;;  %1289 = vmatpush3.xpose.msra.mxu0 %v589_v33 }
  0x59   :  { %1290 = vmatprep.subr.mxu0 %v588_v36 }
  0x5b   :  { %1231 = vmatmul.mubr.f32.gmra.mxu1 %v80_v28 }
  0x5c   :  { %1233 = vmatprep.mubr.f32.mxu1 %v81_v29  ;;  %1291 = vmatpush3.xpose.msra.mxu0 %v588_v36 }
  0x5d   :  { %1292 = vmatprep.subr.mxu0 %v587_v39 }
  0x5f   :  { %1234 = vmatmul.mubr.f32.gmra.mxu1 %v82_v31 }
  0x60   :  { %1236 = vmatprep.mubr.f32.mxu1 %v83_v32  ;;  %1293 = vmatpush3.xpose.msra.mxu0 %v587_v39 }
  0x61   :  { %1294 = vmatprep.subr.mxu0 %v586_v42 }
  0x63   :  { %1237 = vmatmul.mubr.f32.gmra.mxu1 %v84_v34 }
  0x64   :  { %1239 = vmatprep.mubr.f32.mxu1 %v85_v35  ;;  %1295 = vmatpush3.xpose.msra.mxu0 %v586_v42 }
  0x65   :  { %1296 = vmatprep.subr.mxu0 %v585_v45 }
  0x67   :  { %1240 = vmatmul.mubr.f32.gmra.mxu1 %v86_v37 }
  0x68   :  { %1242 = vmatprep.mubr.f32.mxu1 %v87_v38  ;;  %1297 = vmatpush3.xpose.msra.mxu0 %v585_v45 }
  0x69   :  { %1298 = vmatprep.subr.mxu0 %v584_v48 }
  0x6b   :  { %1243 = vmatmul.mubr.f32.gmra.mxu1 %v88_v40 }
  0x6c   :  { %1245 = vmatprep.mubr.f32.mxu1 %v89_v41  ;;  %1299 = vmatpush3.xpose.msra.mxu0 %v584_v48 }
  0x6d   :  { %1300 = vmatprep.subr.mxu0 %v583_v51 }
  0x6f   :  { %1246 = vmatmul.mubr.f32.gmra.mxu1 %v90_v43 }
  0x70   :  { %1248 = vmatprep.mubr.f32.mxu1 %v91_v44  ;;  %1301 = vmatpush3.xpose.msra.mxu0 %v583_v51 }
  0x71   :  { %1302 = vmatprep.subr.mxu0 %v582_v63 }
  0x73   :  { %1249 = vmatmul.mubr.f32.gmra.mxu1 %v92_v46 }
  0x74   :  { %1251 = vmatprep.mubr.f32.mxu1 %v93_v47  ;;  %1303 = vmatpush3.xpose.msra.mxu0 %v582_v63 }
  0x77   :  { %1252 = vmatmul.mubr.f32.gmra.mxu1 %v94_v49 }
  0x78   :  { %1254 = vmatprep.mubr.f32.mxu1 %v95_v50 }
  0x7b   :  { %1255 = vmatmul.mubr.f32.gmra.mxu1 %v96_v52 }
  0x7c   :  { %1257 = vmatprep.mubr.f32.mxu1 %v97_v53 }
  0x7f   :  { %1258 = vmatmul.mubr.f32.gmra.mxu1 %v98_v54 }
  0x80   :  { %1260 = vmatprep.mubr.f32.mxu1 %v99_v55 }
  0x83   :  { %1261 = vmatmul.mubr.f32.gmra.mxu1 %v100_v56 }
  0x84   :  { %1263 = vmatprep.mubr.f32.mxu1 %v101_v57 }
  0x87   :  { %1264 = vmatmul.mubr.f32.gmra.mxu1 %v102_v58 }
  0x88   :  { %1266 = vmatprep.mubr.f32.mxu1 %v103_v59 }
  0x8b   :  { %1267 = vmatmul.mubr.f32.gmra.mxu1 %v104_v60 }
  0x8c   :  { %1269 = vmatprep.mubr.f32.mxu1 %v105_v61 }
  0x8f   :  { %1270 = vmatmul.mubr.f32.gmra.mxu1 %v106_v62 }
  0x90   :  { %1142 = vmatprep.mubr.f32.mxu1 %v1580_v0 }
 0x113   :  { %v1583_v1 = vpop.f32.mrf.mxu1 }
 0x115   :  { %v1585_v2 = vpop.f32.mrf.mxu1 }
 0x116   :  { %v970_v3 = vpack.c.bf16 %v1583_v1, %v1585_v2  ;;  %1304 = vmatprep.mubr.f32.mxu0 %v1585_v2 }
 0x117   :  { %v1590_v4 = vpop.f32.mrf.mxu1  ;;  %1305 = vmatmul.mubr.f32.vlgmr.msra.gmra.mxu0 %v1583_v1 }
 0x118   :  { %971 = vst [vmem:[#allocation10] sm:$0xff] %v970_v3  }
 0x119   :  { %v1593_v5 = vpop.f32.mrf.mxu1 }
 0x11a   :  { %v975_v6 = vpack.c.bf16 %v1590_v4, %v1593_v5  ;;  %1307 = vmatprep.mubr.f32.mxu0 %v1593_v5 }
 0x11b   :  { %v1598_v7 = vpop.f32.mrf.mxu1  ;;  %1308 = vmatmul.mubr.f32.gmra.mxu0 %v1590_v4 }
 0x11c   :  { %1047 = vst [vmem:[#allocation10 + $0x8] sm:$0xff] %v975_v6  }
 0x11d   :  { %v1601_v8 = vpop.f32.mrf.mxu1 }
 0x11e   :  { %v980_v9 = vpack.c.bf16 %v1598_v7, %v1601_v8  ;;  %1310 = vmatprep.mubr.f32.mxu0 %v1601_v8 }
 0x11f   :  { %v1606_v10 = vpop.f32.mrf.mxu1  ;;  %1311 = vmatmul.mubr.f32.gmra.mxu0 %v1598_v7 }
 0x120   :  { %1048 = vst [vmem:[#allocation10 + $0x10] sm:$0xff] %v980_v9  }
 0x121   :  { %v1609_v11 = vpop.f32.mrf.mxu1 }
 0x122   :  { %v985_v12 = vpack.c.bf16 %v1606_v10, %v1609_v11  ;;  %1313 = vmatprep.mubr.f32.mxu0 %v1609_v11 }
 0x123   :  { %v1614_v13 = vpop.f32.mrf.mxu1  ;;  %1314 = vmatmul.mubr.f32.gmra.mxu0 %v1606_v10 }
 0x124   :  { %1049 = vst [vmem:[#allocation10 + $0x18] sm:$0xff] %v985_v12  }
 0x125   :  { %v1617_v14 = vpop.f32.mrf.mxu1 }
 0x126   :  { %v990_v15 = vpack.c.bf16 %v1614_v13, %v1617_v14  ;;  %1316 = vmatprep.mubr.f32.mxu0 %v1617_v14 }
 0x127   :  { %v1622_v16 = vpop.f32.mrf.mxu1  ;;  %1317 = vmatmul.mubr.f32.gmra.mxu0 %v1614_v13 }
 0x128   :  { %1050 = vst [vmem:[#allocation10 + $0x20] sm:$0xff] %v990_v15  }
 0x129   :  { %v1625_v17 = vpop.f32.mrf.mxu1 }
 0x12a   :  { %v995_v18 = vpack.c.bf16 %v1622_v16, %v1625_v17  ;;  %1319 = vmatprep.mubr.f32.mxu0 %v1625_v17 }
 0x12b   :  { %v1630_v19 = vpop.f32.mrf.mxu1  ;;  %1320 = vmatmul.mubr.f32.gmra.mxu0 %v1622_v16 }
 0x12c   :  { %1051 = vst [vmem:[#allocation10 + $0x28] sm:$0xff] %v995_v18  }
 0x12d   :  { %v1633_v20 = vpop.f32.mrf.mxu1 }
 0x12e   :  { %v1000_v21 = vpack.c.bf16 %v1630_v19, %v1633_v20  ;;  %1322 = vmatprep.mubr.f32.mxu0 %v1633_v20 }
 0x12f   :  { %v1247_v22 = vpop.f32.mrf.mxu1  ;;  %1323 = vmatmul.mubr.f32.gmra.mxu0 %v1630_v19 }
 0x130   :  { %1052 = vst [vmem:[#allocation10 + $0x30] sm:$0xff] %v1000_v21  }
 0x131   :  { %v259_v23 = vpop.f32.mrf.mxu1 }
 0x132   :  { %v1005_v24 = vpack.c.bf16 %v1247_v22, %v259_v23  ;;  %1325 = vmatprep.mubr.f32.mxu0 %v259_v23 }
 0x133   :  { %v1639_v25 = vpop.f32.mrf.mxu1  ;;  %1326 = vmatmul.mubr.f32.gmra.mxu0 %v1247_v22 }
 0x134   :  { %1053 = vst [vmem:[#allocation10 + $0x38] sm:$0xff] %v1005_v24  }
 0x135   :  { %v1641_v26 = vpop.f32.mrf.mxu1 }
 0x136   :  { %v1010_v27 = vpack.c.bf16 %v1639_v25, %v1641_v26  ;;  %1328 = vmatprep.mubr.f32.mxu0 %v1641_v26 }
 0x137   :  { %v1646_v28 = vpop.f32.mrf.mxu1  ;;  %1329 = vmatmul.mubr.f32.gmra.mxu0 %v1639_v25 }
 0x138   :  { %1054 = vst [vmem:[#allocation10 + $0x40] sm:$0xff] %v1010_v27  }
 0x139   :  { %v1649_v29 = vpop.f32.mrf.mxu1 }
 0x13a   :  { %v1015_v30 = vpack.c.bf16 %v1646_v28, %v1649_v29  ;;  %1331 = vmatprep.mubr.f32.mxu0 %v1649_v29 }
 0x13b   :  { %v1256_v31 = vpop.f32.mrf.mxu1  ;;  %1332 = vmatmul.mubr.f32.gmra.mxu0 %v1646_v28 }
 0x13c   :  { %1055 = vst [vmem:[#allocation10 + $0x48] sm:$0xff] %v1015_v30  }
 0x13d   :  { %v289_v32 = vpop.f32.mrf.mxu1 }
 0x13e   :  { %v1020_v33 = vpack.c.bf16 %v1256_v31, %v289_v32  ;;  %1334 = vmatprep.mubr.f32.mxu0 %v289_v32 }
 0x13f   :  { %v1259_v34 = vpop.f32.mrf.mxu1  ;;  %1335 = vmatmul.mubr.f32.gmra.mxu0 %v1256_v31 }
 0x140   :  { %1056 = vst [vmem:[#allocation10 + $0x50] sm:$0xff] %v1020_v33  }
 0x141   :  { %v299_v35 = vpop.f32.mrf.mxu1 }
 0x142   :  { %v1025_v36 = vpack.c.bf16 %v1259_v34, %v299_v35  ;;  %1337 = vmatprep.mubr.f32.mxu0 %v299_v35 }
 0x143   :  { %v1262_v37 = vpop.f32.mrf.mxu1  ;;  %1338 = vmatmul.mubr.f32.gmra.mxu0 %v1259_v34 }
 0x144   :  { %1057 = vst [vmem:[#allocation10 + $0x58] sm:$0xff] %v1025_v36  }
 0x145   :  { %v309_v38 = vpop.f32.mrf.mxu1 }
 0x146   :  { %v1030_v39 = vpack.c.bf16 %v1262_v37, %v309_v38  ;;  %1340 = vmatprep.mubr.f32.mxu0 %v309_v38 }
 0x147   :  { %v1265_v40 = vpop.f32.mrf.mxu1  ;;  %1341 = vmatmul.mubr.f32.gmra.mxu0 %v1262_v37 }
 0x148   :  { %1058 = vst [vmem:[#allocation10 + $0x60] sm:$0xff] %v1030_v39  }
 0x149   :  { %v319_v41 = vpop.f32.mrf.mxu1 }
 0x14a   :  { %v1035_v42 = vpack.c.bf16 %v1265_v40, %v319_v41  ;;  %1343 = vmatprep.mubr.f32.mxu0 %v319_v41 }
 0x14b   :  { %v1268_v43 = vpop.f32.mrf.mxu1  ;;  %1344 = vmatmul.mubr.f32.gmra.mxu0 %v1265_v40 }
 0x14c   :  { %1059 = vst [vmem:[#allocation10 + $0x68] sm:$0xff] %v1035_v42  }
 0x14d   :  { %v329_v44 = vpop.f32.mrf.mxu1 }
 0x14e   :  { %v1040_v45 = vpack.c.bf16 %v1268_v43, %v329_v44  ;;  %1346 = vmatprep.mubr.f32.mxu0 %v329_v44 }
 0x14f   :  { %v1271_v46 = vpop.f32.mrf.mxu1  ;;  %1347 = vmatmul.mubr.f32.gmra.mxu0 %v1268_v43 }
 0x150   :  { %1060 = vst [vmem:[#allocation10 + $0x70] sm:$0xff] %v1040_v45   ;;  %1110 = vmatprep.subr.mxu1 %v1271_v46 }
 0x151   :  { %v339_v47 = vpop.f32.mrf.mxu1  ;;  %1111 = vmatpush3.xpose.msra.mxu1 %v1247_v22 }
 0x152   :  { %v1045_v48 = vpack.c.bf16 %v1271_v46, %v339_v47  ;;  %1112 = vmatprep.subr.mxu1 %v339_v47  ;;  %1349 = vmatprep.mubr.f32.mxu0 %v339_v47 }
 0x153   :  { %1350 = vmatmul.mubr.f32.gmra.mxu0 %v1271_v46 }
 0x154   :  { %1061 = vst [vmem:[#allocation10 + $0x78] sm:$0xff] %v1045_v48  }
 0x155   :  { %1113 = vmatpush3.xpose.msra.mxu1 %v259_v23 }
 0x156   :  { %1114 = vmatprep.subr.mxu1 %v1268_v43 }
 0x159   :  { %1115 = vmatpush3.xpose.msra.mxu1 %v1630_v19 }
 0x15a   :  { %1116 = vmatprep.subr.mxu1 %v329_v44 }
 0x15d   :  { %1117 = vmatpush3.xpose.msra.mxu1 %v1633_v20 }
 0x15e   :  { %1118 = vmatprep.subr.mxu1 %v1265_v40 }
 0x161   :  { %1119 = vmatpush3.xpose.msra.mxu1 %v1622_v16 }
 0x162   :  { %1120 = vmatprep.subr.mxu1 %v319_v41 }
 0x165   :  { %1121 = vmatpush3.xpose.msra.mxu1 %v1625_v17 }
 0x166   :  { %1122 = vmatprep.subr.mxu1 %v1262_v37 }
 0x169   :  { %1123 = vmatpush3.xpose.msra.mxu1 %v1614_v13 }
 0x16a   :  { %1124 = vmatprep.subr.mxu1 %v309_v38 }
 0x16d   :  { %1125 = vmatpush3.xpose.msra.mxu1 %v1617_v14 }
 0x16e   :  { %1126 = vmatprep.subr.mxu1 %v1259_v34 }
 0x171   :  { %1127 = vmatpush3.xpose.msra.mxu1 %v1606_v10 }
 0x172   :  { %1128 = vmatprep.subr.mxu1 %v299_v35 }
 0x175   :  { %1129 = vmatpush3.xpose.msra.mxu1 %v1609_v11 }
 0x176   :  { %1130 = vmatprep.subr.mxu1 %v1256_v31 }
 0x179   :  { %1131 = vmatpush3.xpose.msra.mxu1 %v1598_v7 }
 0x17a   :  { %1132 = vmatprep.subr.mxu1 %v289_v32 }
 0x17d   :  { %1133 = vmatpush3.xpose.msra.mxu1 %v1601_v8 }
 0x17e   :  { %1134 = vmatprep.subr.mxu1 %v1646_v28 }
 0x181   :  { %1135 = vmatpush3.xpose.msra.mxu1 %v1590_v4 }
 0x182   :  { %1136 = vmatprep.subr.mxu1 %v1649_v29 }
 0x185   :  { %1137 = vmatpush3.xpose.msra.mxu1 %v1593_v5 }
 0x186   :  { %1138 = vmatprep.subr.mxu1 %v1639_v25 }
 0x189   :  { %1139 = vmatpush3.xpose.msra.mxu1 %v1583_v1 }
 0x18a   :  { %1140 = vmatprep.subr.mxu1 %v1641_v26 }
 0x18d   :  { %1141 = vmatpush3.xpose.msra.mxu1 %v1585_v2 }
 0x190   :  { %1143 = vmatmul.mubr.f32.vlgmr.msra.gmra.mxu1 %v1580_v0 }
 0x191   :  { %1454 = shalt.err (!%p1451_p10)
}
 0x192   :  { %s1520_s18 = smov 64   ;;  %s1521_s19 = smov 4  }
 0x193   :  { %866 = dma.vmem_to_hbm [thread:$0]  %s861_s3, 2048, %s1690_s4, [#allocation4], %s1520_s18, %s1520_s18, %s1521_s19  }
 0x194   :  { %s1522_s4 = smov [#allocation11]   ;;  %s1523_s23 = smov [#allocation13]  }
 0x195   :  { %s873_s22 = sshll.u32 %s1522_s4, 4  ;;  %s882_s24 = sshll.u32 %s1523_s23, 4  ;;  %s874_s22 = int_to_ptr.vmem [resolvable:$true] %s873_s22  ;;  %s883_s24 = int_to_ptr.vmem [resolvable:$true] %s882_s24 }
 0x196   :  { %s1463_s25 = scalar_lea.vmem %s874_s22, 256  ;;  %p1468_p12 = scmp.lt.s32.totalorder %s874_s22, %s874_s22 }
 0x197   :  { %p1464_p11 = scmp.ne.s32.totalorder %s874_s22, %s1463_s25  ;;  %p1469_p13 = scmp.lt.s32.totalorder %s1463_s25, %s1463_s25 }
 0x199   :  { %p1470_p0 = por %p1469_p13, %p1468_p12 }
 0x19b   :  { %p1471_p1 = pnand %p1470_p0, %p1464_p11 }
 0x1d7   :  { %v1306_v49 = vpop.f32.mrf.mxu0 }
 0x1d8   :  { %824 = vst [vmem:[#allocation13 + $0x8] sm:$0xff] %v1306_v49 }
 0x1d9   :  { %v664_v50 = vpop.f32.mrf.mxu0 }
 0x1da   :  { %823 = vst [vmem:[#allocation13] sm:$0xff] %v664_v50 }
 0x1db   :  { %v1309_v51 = vpop.f32.mrf.mxu0 }
 0x1dc   :  { %826 = vst [vmem:[#allocation13 + $0x18] sm:$0xff] %v1309_v51 }
 0x1dd   :  { %v674_v52 = vpop.f32.mrf.mxu0 }
 0x1de   :  { %825 = vst [vmem:[#allocation13 + $0x10] sm:$0xff] %v674_v52 }
 0x1df   :  { %v1312_v53 = vpop.f32.mrf.mxu0 }
 0x1e0   :  { %828 = vst [vmem:[#allocation13 + $0x28] sm:$0xff] %v1312_v53 }
 0x1e1   :  { %v684_v54 = vpop.f32.mrf.mxu0 }
 0x1e2   :  { %827 = vst [vmem:[#allocation13 + $0x20] sm:$0xff] %v684_v54 }
 0x1e3   :  { %v1315_v55 = vpop.f32.mrf.mxu0 }
 0x1e4   :  { %830 = vst [vmem:[#allocation13 + $0x38] sm:$0xff] %v1315_v55 }
 0x1e5   :  { %v694_v56 = vpop.f32.mrf.mxu0 }
 0x1e6   :  { %829 = vst [vmem:[#allocation13 + $0x30] sm:$0xff] %v694_v56 }
 0x1e7   :  { %v1318_v57 = vpop.f32.mrf.mxu0 }
 0x1e8   :  { %832 = vst [vmem:[#allocation13 + $0x48] sm:$0xff] %v1318_v57 }
 0x1e9   :  { %v704_v58 = vpop.f32.mrf.mxu0 }
 0x1ea   :  { %831 = vst [vmem:[#allocation13 + $0x40] sm:$0xff] %v704_v58 }
 0x1eb   :  { %v1321_v59 = vpop.f32.mrf.mxu0 }
 0x1ec   :  { %834 = vst [vmem:[#allocation13 + $0x58] sm:$0xff] %v1321_v59 }
 0x1ed   :  { %v714_v60 = vpop.f32.mrf.mxu0 }
 0x1ee   :  { %833 = vst [vmem:[#allocation13 + $0x50] sm:$0xff] %v714_v60 }
 0x1ef   :  { %v1324_v61 = vpop.f32.mrf.mxu0 }
 0x1f0   :  { %836 = vst [vmem:[#allocation13 + $0x68] sm:$0xff] %v1324_v61 }
 0x1f1   :  { %v724_v62 = vpop.f32.mrf.mxu0 }
 0x1f2   :  { %835 = vst [vmem:[#allocation13 + $0x60] sm:$0xff] %v724_v62 }
 0x1f3   :  { %v1327_v63 = vpop.f32.mrf.mxu0 }
 0x1f4   :  { %838 = vst [vmem:[#allocation13 + $0x78] sm:$0xff] %v1327_v63 }
 0x1f5   :  { %v734_v0 = vpop.f32.mrf.mxu0 }
 0x1f6   :  { %837 = vst [vmem:[#allocation13 + $0x70] sm:$0xff] %v734_v0 }
 0x1f7   :  { %v1330_v1 = vpop.f32.mrf.mxu0 }
 0x1f8   :  { %840 = vst [vmem:[#allocation13 + $0x88] sm:$0xff] %v1330_v1 }
 0x1f9   :  { %v744_v2 = vpop.f32.mrf.mxu0 }
 0x1fa   :  { %839 = vst [vmem:[#allocation13 + $0x80] sm:$0xff] %v744_v2 }
 0x1fb   :  { %v1333_v3 = vpop.f32.mrf.mxu0 }
 0x1fc   :  { %842 = vst [vmem:[#allocation13 + $0x98] sm:$0xff] %v1333_v3 }
 0x1fd   :  { %v754_v4 = vpop.f32.mrf.mxu0 }
 0x1fe   :  { %841 = vst [vmem:[#allocation13 + $0x90] sm:$0xff] %v754_v4 }
 0x1ff   :  { %v1336_v5 = vpop.f32.mrf.mxu0 }
 0x200   :  { %844 = vst [vmem:[#allocation13 + $0xa8] sm:$0xff] %v1336_v5 }
 0x201   :  { %v764_v6 = vpop.f32.mrf.mxu0 }
 0x202   :  { %843 = vst [vmem:[#allocation13 + $0xa0] sm:$0xff] %v764_v6 }
 0x203   :  { %v1339_v7 = vpop.f32.mrf.mxu0 }
 0x204   :  { %846 = vst [vmem:[#allocation13 + $0xb8] sm:$0xff] %v1339_v7 }
 0x205   :  { %v774_v8 = vpop.f32.mrf.mxu0 }
 0x206   :  { %845 = vst [vmem:[#allocation13 + $0xb0] sm:$0xff] %v774_v8 }
 0x207   :  { %v1342_v9 = vpop.f32.mrf.mxu0 }
 0x208   :  { %848 = vst [vmem:[#allocation13 + $0xc8] sm:$0xff] %v1342_v9 }
 0x209   :  { %v784_v10 = vpop.f32.mrf.mxu0 }
 0x20a   :  { %847 = vst [vmem:[#allocation13 + $0xc0] sm:$0xff] %v784_v10 }
 0x20b   :  { %v1345_v11 = vpop.f32.mrf.mxu0 }
 0x20c   :  { %850 = vst [vmem:[#allocation13 + $0xd8] sm:$0xff] %v1345_v11 }
 0x20d   :  { %v794_v12 = vpop.f32.mrf.mxu0 }
 0x20e   :  { %849 = vst [vmem:[#allocation13 + $0xd0] sm:$0xff] %v794_v12 }
 0x20f   :  { %v1348_v13 = vpop.f32.mrf.mxu0 }
 0x210   :  { %852 = vst [vmem:[#allocation13 + $0xe8] sm:$0xff] %v1348_v13 }
 0x211   :  { %v804_v14 = vpop.f32.mrf.mxu0 }
 0x212   :  { %851 = vst [vmem:[#allocation13 + $0xe0] sm:$0xff] %v804_v14 }
 0x213   :  { %v1351_v15 = vpop.f32.mrf.mxu0 }
 0x214   :  { %854 = vst [vmem:[#allocation13 + $0xf8] sm:$0xff] %v1351_v15 }
 0x215   :  { %v814_v16 = vpop.f32.mrf.mxu0 }
 0x216   :  { %853 = vst [vmem:[#allocation13 + $0xf0] sm:$0xff] %v814_v16 }
 0x250   :  { %v575_v17 = vpop.f32.mrf.mxu1 }
 0x251   :  { %580 = vst [vmem:[#allocation11] sm:$0xff] %v575_v17 }
 0x252   :  { %v577_v18 = vpop.f32.mrf.mxu1 }
 0x253   :  { %581 = vst [vmem:[#allocation11 + $0x8] sm:$0xff] %v577_v18 }
 0x254   :  { %1474 = shalt.err (!%p1471_p1)
}
 0x255   :  { %876 = dma.vmem_to_hbm [thread:$0]  %s874_s22, 256, %s1691_s5, [#allocation12]  }
 0x256   :  { %s1483_s30 = scalar_lea.vmem %s883_s24, 4096  ;;  %p1488_p3 = scmp.lt.s32.totalorder %s883_s24, %s883_s24 }
 0x257   :  { %p1484_p2 = scmp.ne.s32.totalorder %s883_s24, %s1483_s30  ;;  %p1489_p4 = scmp.lt.s32.totalorder %s1483_s30, %s1483_s30 }
 0x259   :  { %p1490_p5 = por %p1489_p4, %p1488_p3 }
 0x25b   :  { %p1491_p6 = pnand %p1490_p5, %p1484_p2 }
 0x25d   :  { %1494 = shalt.err (!%p1491_p6)
}
 0x25e   :  { %888 = dma.vmem_to_hbm [thread:$0]  %s883_s24, 4096, %s1692_s6, [#allocation12], %s1515_s26, %s1515_s26, %s1516_s27  }
 0x25f   :  { %1509 = dma.done.wait [#allocation4], 2048  }
 0x260   :  { %1510 = vsyncadd [#allocation4], 4294965248 }
 0x261   :  { %1511 = dma.done.wait [#allocation12], 4352  }
 0x262   :  { %1512 = vsyncadd [#allocation12], 4294962944 }
 0x263   :  { %898 = vsyncpa [#allocation3], 1 }
 0x264   :  { %899 = vsyncpa [#allocation6], 1 }
 0x265   :  { %900 = vsyncpa [#allocation9], 1 }
 0x266   :  { %901 = vsyncpa [#allocation4], 1 }
 0x267   :  { %902 = vsyncpa [#allocation12], 1 }

</bundles_post_ra>
